<compile_context>
chip_gen: v6e
topology: v6e:2x2x1
jax: 0.10.0
libtpu: 0.0.40
codegen_flags: <defaults>
</compile_context>

<pallas_src>
import jax
import jax.numpy as jnp
from jax.experimental import pallas as pl
from jax.experimental.pallas import tpu as pltpu

IN_DIM = 256 * 2 * 2   # 1024
H1 = 128
H2 = 64
OUT_DIM = 1


def fcn_kernel(x_ref, w1_ref, b1_ref, w2_ref, b2_ref, w3_ref, b3_ref, o_ref):
    # fc1: cast the activation tile to bf16 in-register (HBM read stays in the
    # input's native dtype); bf16 MXU operands with f32 accumulation.
    x_bf = x_ref[...].astype(jnp.bfloat16)
    h1 = jnp.dot(x_bf, w1_ref[...], preferred_element_type=jnp.float32)
    h1 = jnp.maximum(h1 + b1_ref[...], 0.0)

    # fc2: negligible FLOPs -> keep it fully f32 (closer to the f32 module).
    h2 = jnp.dot(h1, w2_ref[...], preferred_element_type=jnp.float32)
    h2 = jnp.maximum(h2 + b2_ref[...], 0.0)

    # fc3 (N=1): keep it off the MXU -- VPU multiply + XLU lane reduction.
    out = jnp.sum(h2 * w3_ref[...], axis=-1, keepdims=True) + b3_ref[...]
    o_ref[...] = out.astype(o_ref.dtype)


def _round_up(n, m):
    return (n + m - 1) // m * m


def _choose_batch_tile(B, batch_tile):
    """Batch tile: 8-row aligned, capped at `batch_tile`, and sized so there
    are >= 4 grid steps when the batch allows (>= 2 per v7x TensorCore so the
    per-step x DMA is hidden behind the previous step's compute). Tiny batches
    fall back to a single full-extent block."""
    if B <= 8:
        return B
    tile = max(8, min(batch_tile, _round_up(pl.cdiv(B, 4), 8)))
    if tile >= B:
        tile = B
    return tile


def fcn_layers_forward(x, w1, b1, w2, b2, w3, b3, *, batch_tile=1024):
    B = x.shape[0]
    assert x.shape[1] == IN_DIM
    out_dtype = x.dtype

    # fc1 weight in bf16 (native MXU operand, tiny and resident across steps);
    # everything downstream of fc1 stays f32.
    w1_b = w1.astype(jnp.bfloat16)
    w2_f = w2.astype(jnp.float32)
    w3_row = w3.reshape(1, H2).astype(jnp.float32)
    b1_f = b1.reshape(1, H1).astype(jnp.float32)
    b2_f = b2.reshape(1, H2).astype(jnp.float32)
    b3_f = b3.reshape(1, OUT_DIM).astype(jnp.float32)

    tile = _choose_batch_tile(B, batch_tile)
    grid = (pl.cdiv(B, tile),)   # ragged last tile; OOB output rows are masked

    flops = 2 * B * (IN_DIM * H1 + H1 * H2 + H2 * OUT_DIM)
    bytes_accessed = (
        B * IN_DIM * jnp.dtype(x.dtype).itemsize       # x in its native dtype
        + IN_DIM * H1 * 2                               # w1 (bf16)
        + H1 * H2 * 4                                   # w2 (f32)
        + (H1 + H2 + H2 + OUT_DIM) * 4                  # biases + fc3 row (f32)
        + B * OUT_DIM * jnp.dtype(out_dtype).itemsize   # output
    )

    return pl.pallas_call(
        fcn_kernel,
        out_shape=jax.ShapeDtypeStruct((B, OUT_DIM), out_dtype),
        grid_spec=pltpu.PrefetchScalarGridSpec(
            num_scalar_prefetch=0,
            grid=grid,
            in_specs=[
                pl.BlockSpec((tile, IN_DIM), lambda i: (i, 0)),
                pl.BlockSpec((IN_DIM, H1), lambda i: (0, 0)),
                pl.BlockSpec((1, H1), lambda i: (0, 0)),
                pl.BlockSpec((H1, H2), lambda i: (0, 0)),
                pl.BlockSpec((1, H2), lambda i: (0, 0)),
                pl.BlockSpec((1, H2), lambda i: (0, 0)),
                pl.BlockSpec((1, OUT_DIM), lambda i: (0, 0)),
            ],
            out_specs=pl.BlockSpec((tile, OUT_DIM), lambda i: (i, 0)),
        ),
        compiler_params=pltpu.CompilerParams(
            dimension_semantics=("parallel",),
            # Max x block (1024 rows f32) = 4 MiB -> 8 MiB double-buffered plus
            # ~0.6 MiB of resident weights/intermediates: well inside 32 MiB,
            # which also leaves headroom on v7x's 64 MiB physical VMEM.
            vmem_limit_bytes=32 * 1024 * 1024,
        ),
        cost_estimate=pl.CostEstimate(
            flops=flops, transcendentals=0, bytes_accessed=bytes_accessed),
    )(x, w1_b, b1_f, w2_f, b2_f, w3_row, b3_f)


def init_params(key):
    """Deterministic init mimicking nn.Linear's U(-1/sqrt(fan_in), 1/sqrt(fan_in))."""
    ks = jax.random.split(key, 6)

    def lin(kw, kb, fan_in, fan_out):
        bound = 1.0 / jnp.sqrt(fan_in)
        w = jax.random.uniform(kw, (fan_in, fan_out), jnp.float32, -bound, bound)
        b = jax.random.uniform(kb, (1, fan_out), jnp.float32, -bound, bound)
        return w, b

    w1, b1 = lin(ks[0], ks[1], IN_DIM, H1)
    w2, b2 = lin(ks[2], ks[3], H1, H2)
    w3, b3 = lin(ks[4], ks[5], H2, OUT_DIM)
    return w1, b1, w2, b2, w3, b3


if __name__ == "__main__":
    key = jax.random.PRNGKey(0)
    k_param, k_x = jax.random.split(key)

    w1, b1, w2, b2, w3, b3 = init_params(k_param)

    # Small ragged batch: tile=8 -> grid of 3 steps with a masked tail, which
    # exercises both the multi-step pipeline and the ragged-tile path.
    B = 20
    x = jax.random.normal(k_x, (B, IN_DIM), jnp.float32)

    out = jax.block_until_ready(
        fcn_layers_forward(x, w1, b1, w2, b2, w3, b3))

    # Reference mirroring the kernel's numerics: fc1 uses bf16-rounded operands
    # with f32 accumulation; fc2 / fc3 are pure f32.
    hi = jax.lax.Precision.HIGHEST
    xb = x.astype(jnp.bfloat16).astype(jnp.float32)
    w1f = w1.astype(jnp.bfloat16).astype(jnp.float32)
    h1 = jnp.maximum(jnp.dot(xb, w1f, precision=hi) + b1.reshape(1, H1), 0.0)
    h2 = jnp.maximum(jnp.dot(h1, w2, precision=hi) + b2.reshape(1, H2), 0.0)
    ref = (jnp.sum(h2 * w3.reshape(1, H2), axis=-1, keepdims=True)
           + b3.reshape(1, OUT_DIM))

    assert out.shape == (B, OUT_DIM)
    assert jnp.allclose(out, ref, atol=2e-3, rtol=2e-3), (
        float(jnp.max(jnp.abs(out - ref))))

    print("KERNEL_OK")
</pallas_src>

<mosaic_0001>
module attributes {stable_mosaic.version = 11 : i64} {
  func.func @fcn_kernel(%arg0: i32, %arg1: memref<8x1024xf32, #tpu.memory_space<vmem>>, %arg2: memref<1024x128xbf16, #tpu.memory_space<vmem>>, %arg3: memref<1x128xf32, #tpu.memory_space<vmem>>, %arg4: memref<128x64xf32, #tpu.memory_space<vmem>>, %arg5: memref<1x64xf32, #tpu.memory_space<vmem>>, %arg6: memref<1x64xf32, #tpu.memory_space<vmem>>, %arg7: memref<1x1xf32, #tpu.memory_space<vmem>>, %arg8: memref<8x1xf32, #tpu.memory_space<vmem>>) attributes {dimension_semantics = [#tpu.dimension_semantics<parallel>], iteration_bounds = array<i64: 3>, scalar_prefetch = 0 : i64, scratch_operands = 0 : i64, tpu.core_type = #tpu.core_type<tc>, window_params = [{transform_indices = @transform_0, window_bounds = array<i64: 8, 1024>}, {pipeline_mode = #tpu.pipeline_mode<synchronous>, transform_indices = @transform_1, window_bounds = array<i64: 1024, 128>}, {pipeline_mode = #tpu.pipeline_mode<synchronous>, transform_indices = @transform_2, window_bounds = array<i64: 1, 128>}, {pipeline_mode = #tpu.pipeline_mode<synchronous>, transform_indices = @transform_3, window_bounds = array<i64: 128, 64>}, {pipeline_mode = #tpu.pipeline_mode<synchronous>, transform_indices = @transform_4, window_bounds = array<i64: 1, 64>}, {pipeline_mode = #tpu.pipeline_mode<synchronous>, transform_indices = @transform_5, window_bounds = array<i64: 1, 64>}, {pipeline_mode = #tpu.pipeline_mode<synchronous>, transform_indices = @transform_6, window_bounds = array<i64: 1, 1>}, {transform_indices = @transform_7, window_bounds = array<i64: 8, 1>}]} {
    %c0 = arith.constant 0 : index
    %c0_0 = arith.constant 0 : index
    %0 = vector.load %arg1[%c0, %c0_0] : memref<8x1024xf32, #tpu.memory_space<vmem>>, vector<8x1024xf32>
    %1 = arith.truncf %0 : vector<8x1024xf32> to vector<8x1024xbf16>
    %c0_1 = arith.constant 0 : index
    %c0_2 = arith.constant 0 : index
    %2 = vector.load %arg2[%c0_1, %c0_2] : memref<1024x128xbf16, #tpu.memory_space<vmem>>, vector<1024x128xbf16>
    %cst = arith.constant dense<0.000000e+00> : vector<8x128xf32>
    %3 = tpu.matmul %1, %2, %cst {dimension_numbers = #tpu.dot_dimension_numbers<[1], [0], [0], [1], [0, 0, 1, 1], [], []>} : vector<8x1024xbf16>, vector<1024x128xbf16>, vector<8x128xf32> -> vector<8x128xf32>
    %c0_3 = arith.constant 0 : index
    %c0_4 = arith.constant 0 : index
    %4 = vector.load %arg3[%c0_3, %c0_4] : memref<1x128xf32, #tpu.memory_space<vmem>>, vector<1x128xf32>
    %5 = vector.broadcast %4 : vector<1x128xf32> to vector<8x128xf32>
    %6 = arith.addf %3, %5 : vector<8x128xf32>
    %cst_5 = arith.constant 0.000000e+00 : f32
    %7 = vector.broadcast %cst_5 : f32 to vector<8x128xf32>
    %8 = arith.maximumf %6, %7 : vector<8x128xf32>
    %c0_6 = arith.constant 0 : index
    %c0_7 = arith.constant 0 : index
    %9 = vector.load %arg4[%c0_6, %c0_7] : memref<128x64xf32, #tpu.memory_space<vmem>>, vector<128x64xf32>
    %cst_8 = arith.constant dense<0.000000e+00> : vector<8x64xf32>
    %10 = tpu.matmul %8, %9, %cst_8 {dimension_numbers = #tpu.dot_dimension_numbers<[1], [0], [0], [1], [0, 0, 1, 1], [], []>} : vector<8x128xf32>, vector<128x64xf32>, vector<8x64xf32> -> vector<8x64xf32>
    %c0_9 = arith.constant 0 : index
    %c0_10 = arith.constant 0 : index
    %11 = vector.load %arg5[%c0_9, %c0_10] : memref<1x64xf32, #tpu.memory_space<vmem>>, vector<1x64xf32>
    %12 = vector.broadcast %11 : vector<1x64xf32> to vector<8x64xf32>
    %13 = arith.addf %10, %12 : vector<8x64xf32>
    %cst_11 = arith.constant 0.000000e+00 : f32
    %14 = vector.broadcast %cst_11 : f32 to vector<8x64xf32>
    %15 = arith.maximumf %13, %14 : vector<8x64xf32>
    %c0_12 = arith.constant 0 : index
    %c0_13 = arith.constant 0 : index
    %16 = vector.load %arg6[%c0_12, %c0_13] : memref<1x64xf32, #tpu.memory_space<vmem>>, vector<1x64xf32>
    %17 = vector.broadcast %16 : vector<1x64xf32> to vector<8x64xf32>
    %18 = arith.mulf %15, %17 : vector<8x64xf32>
    %cst_14 = arith.constant dense<0.000000e+00> : vector<8xf32>
    %19 = vector.multi_reduction <add>, %18, %cst_14 [1] : vector<8x64xf32> to vector<8xf32>
    %20 = vector.shape_cast %19 : vector<8xf32> to vector<8x1xf32>
    %c0_15 = arith.constant 0 : index
    %c0_16 = arith.constant 0 : index
    %21 = vector.load %arg7[%c0_15, %c0_16] : memref<1x1xf32, #tpu.memory_space<vmem>>, vector<1x1xf32>
    %22 = vector.broadcast %21 : vector<1x1xf32> to vector<8x1xf32>
    %23 = arith.addf %20, %22 : vector<8x1xf32>
    %c0_17 = arith.constant 0 : index
    %c0_18 = arith.constant 0 : index
    %24 = vector.load %arg8[%c0_17, %c0_18] : memref<8x1xf32, #tpu.memory_space<vmem>>, vector<8x1xf32>
    tpu.vector_store %arg8[%c0_17, %c0_18], %23 {strides = array<i32>} : memref<8x1xf32, #tpu.memory_space<vmem>>, vector<8x1xf32>,
    return
  }
  func.func @transform_0(%arg0: i32) -> (i32, i32) {
    %c0_i32 = arith.constant 0 : i32
    %c0_i32_0 = arith.constant 0 : i32
    return %arg0, %c0_i32 : i32, i32
  }
  func.func @transform_1(%arg0: i32) -> (i32, i32) {
    %c0_i32 = arith.constant 0 : i32
    %c0_i32_0 = arith.constant 0 : i32
    %c0_i32_1 = arith.constant 0 : i32
    return %c0_i32, %c0_i32_0 : i32, i32
  }
  func.func @transform_2(%arg0: i32) -> (i32, i32) {
    %c0_i32 = arith.constant 0 : i32
    %c0_i32_0 = arith.constant 0 : i32
    %c0_i32_1 = arith.constant 0 : i32
    return %c0_i32, %c0_i32_0 : i32, i32
  }
  func.func @transform_3(%arg0: i32) -> (i32, i32) {
    %c0_i32 = arith.constant 0 : i32
    %c0_i32_0 = arith.constant 0 : i32
    %c0_i32_1 = arith.constant 0 : i32
    return %c0_i32, %c0_i32_0 : i32, i32
  }
  func.func @transform_4(%arg0: i32) -> (i32, i32) {
    %c0_i32 = arith.constant 0 : i32
    %c0_i32_0 = arith.constant 0 : i32
    %c0_i32_1 = arith.constant 0 : i32
    return %c0_i32, %c0_i32_0 : i32, i32
  }
  func.func @transform_5(%arg0: i32) -> (i32, i32) {
    %c0_i32 = arith.constant 0 : i32
    %c0_i32_0 = arith.constant 0 : i32
    %c0_i32_1 = arith.constant 0 : i32
    return %c0_i32, %c0_i32_0 : i32, i32
  }
  func.func @transform_6(%arg0: i32) -> (i32, i32) {
    %c0_i32 = arith.constant 0 : i32
    %c0_i32_0 = arith.constant 0 : i32
    %c0_i32_1 = arith.constant 0 : i32
    return %c0_i32, %c0_i32_0 : i32, i32
  }
  func.func @transform_7(%arg0: i32) -> (i32, i32) {
    %c0_i32 = arith.constant 0 : i32
    %c0_i32_0 = arith.constant 0 : i32
    return %arg0, %c0_i32 : i32, i32
  }
}

</mosaic_0001>

<bundles_post_ra>
// kernel: tpu_custom_call.1
= control target key start
LH: loop header
LB: loop body
LE: loop exit
PB: predicated region body
PF: predicated region fallthrough
CT: control target
= control target key end

     0   :  { %s1676_s0 = inlined_call_operand.vmem [shape: f32[20,1024], index: 0, kind: input, shape index: {}]   ;;  %s1677_s1 = inlined_call_operand.hbm [shape: bf16[1024,128], index: 1, kind: input, shape index: {}]   ;;  %s1678_s2 = inlined_call_operand.vmem [shape: f32[1,128], index: 2, kind: input, shape index: {}]   ;;  %s1679_s3 = inlined_call_operand.vmem [shape: f32[128,64], index: 3, kind: input, shape index: {}]   ;;  %s1680_s4 = inlined_call_operand.vmem [shape: f32[1,64], index: 4, kind: input, shape index: {}]   ;;  %s1681_s5 = inlined_call_operand.vmem [shape: f32[1,64], index: 5, kind: input, shape index: {}]   ;;  %s1682_s6 = inlined_call_operand.<no memory space> [shape: f32[1,1], index: 6, kind: input, shape index: {}]   ;;  %s1683_s7 = inlined_call_operand.vmem [shape: f32[20,1], index: 7, kind: output, shape index: {}]  }
   0x1   :  { %v12_v0 = vstv %s1682_s6 }
   0x2   :  { %13 = vst [vmem:[#allocation2] sm:$0x1] %v12_v0 }
   0x3   :  { %14 = vsyncpa [#allocation4], 0  ;;  %s1566_s26 = smov 0  }
   0x4 LB: > { %s1572_s27 = sadd.s32 4294967295, %s1516_s26   ;;  %p1174_p0 = scmp.ge.s32.totalorder %s1516_s26, 1  ;;  %s1516_s26 = sphi %s1566_s26, %s20_s26  }
   0x5   : > { %p203_p1 = scmp.lt.s32.totalorder %s1516_s26, 4  ;;  %s1518_s28 = smov [#allocation3]  }
   0x6   : > { %s215_s6 = sshll.u32 %s1518_s28, 4  ;;  %p1401_p3 = scmp.eq.s32.totalorder %s1572_s27, 0  ;;  %s216_s6 = int_to_ptr.vmem [resolvable:$true] %s215_s6 }
   0x7   : > { %p1576_p2 = pnand %p1174_p0, %p203_p1  ;;  %s1491_s30 = scalar_lea.vmem %s216_s6, 8192 }
   0x8   : > { %p1492_p7 = scmp.ne.s32.totalorder %s216_s6, %s1491_s30  ;;  %p1499_p10 = scmp.lt.s32.totalorder %s216_s6, %s216_s6 }
   0x9   : > { %p1397_p4 = pneg %p1576_p2  ;;  %p1500_p11 = scmp.lt.s32.totalorder %s1491_s30, %s1491_s30 }
   0xb   : > { %p1398_p5 = pnand %p1401_p3, %p1397_p4  ;;  %p1501_p12 = por %p1500_p11, %p1499_p10 }
   0xd   : > { %p1482_p6 = pneg %p1398_p5 }
   0xf   : > { %p1494_p8 = pnand %p1492_p7, %p1482_p6 }
  0x11   : > { %p1495_p9 = pneg %p1494_p8 }
  0x13   : > { %p1502_p13 = pnand %p1501_p12, %p1495_p9 }
  0x15   : > { %1505 = shalt.err (!%p1502_p13)
}
  0x16   : > { %s1519_s8 = smov 64   ;;  %s1520_s9 = smov 4  }
  0x17   : > { %1400 = dma.hbm_to_vmem [thread:$0]  (!%p1398_p5), %s1677_s1, 8192, %s216_s6, [#allocation4], %s1519_s8, %s1519_s8, %s1520_s9  }
  0x18   : > { %254 = sbr.rel (%p1576_p2) target bundleno = 640 (0x280), region = 48 }
  0x1d   : > { %1511 = dma.done.wait (%p1401_p3), [#allocation4], 8192  }
  0x1e   : > { %1513 = vsyncadd (%p1401_p3), [#allocation4], 4294959104  ;;  %v1416_v1 = vld [vmem:[#allocation3 + $0x78] sm:$0xff]   ;;  %v1420_v5 = vld [vmem:[#allocation3 + $0x70] sm:$0xff]   ;;  %p285_p0 = scmp.lt.s32.totalorder %s1572_s27, 2  ;;  %vm1522_vm0 = vmmov 0  }
  0x1f   : > { %v1417_v2 = vld [vmem:[#allocation3 + $0xf8] sm:$0xff]   ;;  %1253 = vmatprep.subr.bf16.mxu0 %v1416_v1  ;;  %v1421_v6 = vld [vmem:[#allocation3 + $0xf0] sm:$0xff]   ;;  %v1424_v9 = vld [vmem:[#allocation3 + $0x68] sm:$0xff]   ;;  %vm1093_vm1 = vcmask 523264   ;;  %vm1105_vm2 = vcmask 7168  }
  0x20   : > { %v1418_v3 = vld [vmem:[#allocation3 + $0x38] sm:$0xff]   ;;  %1275 = vmatprep.subr.bf16.mxu1 %v1417_v2  ;;  %v1422_v7 = vld [vmem:[#allocation3 + $0x30] sm:$0xff]   ;;  %v1425_v10 = vld [vmem:[#allocation3 + $0xe8] sm:$0xff]   ;;  %s1686_s27 = smov (!%p285_p0, %s1572_s27), 2 }
  0x21   : > { %v1419_v4 = vld [vmem:[#allocation3 + $0xb8] sm:$0xff]   ;;  %1254 = vmatpush3.bf16.msra.mxu0 %v1418_v3  ;;  %v1423_v8 = vld [vmem:[#allocation3 + $0xb0] sm:$0xff]   ;;  %v1426_v11 = vld [vmem:[#allocation3 + $0x28] sm:$0xff]   ;;  %s1252_s12 = sshll.u32 %s1686_s27, 6  ;;  %s1181_s10 = sshll.u32 %s1686_s27, 3 }
  0x22   : > { %1276 = vmatpush3.bf16.msra.mxu1 %v1419_v4  ;;  %1255 = vmatprep.subr.bf16.mxu0 %v1420_v5  ;;  %v1427_v12 = vld [vmem:[#allocation3 + $0xa8] sm:$0xff]   ;;  %v1428_v13 = vld [vmem:[#allocation3 + $0x60] sm:$0xff]   ;;  %v1432_v17 = vld [vmem:[#allocation3 + $0x58] sm:$0xff]   ;;  %s1602_s15 = scalar_lea.vmem %s1676_s0, %s1252_s12  ;;  %s293_s13 = scalar_lea.vmem %s1683_s7, %s1181_s10 }
  0x23   : > { %1277 = vmatprep.subr.bf16.mxu1 %v1421_v6  ;;  %v1429_v14 = vld [vmem:[#allocation3 + $0xe0] sm:$0xff]   ;;  %v1433_v18 = vld [vmem:[#allocation3 + $0xd8] sm:$0xff]   ;;  %v1436_v21 = vld [vmem:[#allocation3 + $0x50] sm:$0xff]  }
  0x24   : > { %v1430_v15 = vld [vmem:[#allocation3 + $0x20] sm:$0xff]   ;;  %v1434_v19 = vld [vmem:[#allocation3 + $0x18] sm:$0xff]   ;;  %v1437_v22 = vld [vmem:[#allocation3 + $0xd0] sm:$0xff]  }
  0x25   : > { %1256 = vmatpush3.bf16.msra.mxu0 %v1422_v7  ;;  %v1431_v16 = vld [vmem:[#allocation3 + $0xa0] sm:$0xff]   ;;  %v1435_v20 = vld [vmem:[#allocation3 + $0x98] sm:$0xff]   ;;  %v1438_v23 = vld [vmem:[#allocation3 + $0x10] sm:$0xff]  }
  0x26   : > { %1278 = vmatpush3.bf16.msra.mxu1 %v1423_v8  ;;  %1257 = vmatprep.subr.bf16.mxu0 %v1424_v9  ;;  %v1439_v24 = vld [vmem:[#allocation3 + $0x90] sm:$0xff]   ;;  %v1440_v25 = vld [vmem:[#allocation3 + $0x48] sm:$0xff]   ;;  %v1444_v29 = vld [vmem:[#allocation3 + $0x40] sm:$0xff]  }
  0x27   : > { %1279 = vmatprep.subr.bf16.mxu1 %v1425_v10  ;;  %v1441_v26 = vld [vmem:[#allocation3 + $0xc8] sm:$0xff]   ;;  %v1445_v30 = vld [vmem:[#allocation3 + $0xc0] sm:$0xff]   ;;  %v298_v34 = vld [vmem:[%s1602_s15 + $0x18] sm:$0xff] }
  0x28   : > { %v1442_v27 = vld [vmem:[#allocation3 + $0x8] sm:$0xff]   ;;  %v1446_v31 = vld [vmem:[#allocation3] sm:$0xff]   ;;  %v306_v37 = vpack.c.bf16 %v298_v34, %v298_v34  ;;  %v1448_v41 = vld [vmem:[#allocation3 + $0x178] sm:$0xff]  }
  0x29   : > { %1258 = vmatpush3.bf16.msra.mxu0 %v1426_v11  ;;  %v1443_v28 = vld [vmem:[#allocation3 + $0x88] sm:$0xff]   ;;  %v1447_v32 = vld [vmem:[#allocation3 + $0x80] sm:$0xff]   ;;  %v1449_v42 = vld [vmem:[#allocation3 + $0x1f8] sm:$0xff]  }
  0x2a   : > { %1280 = vmatpush3.bf16.msra.mxu1 %v1427_v12  ;;  %1259 = vmatprep.subr.bf16.mxu0 %v1428_v13  ;;  %v296_v33 = vld [vmem:[%s1602_s15 + $0x8] sm:$0xff]  ;;  %v295_v35 = vld [vmem:[%s1602_s15] sm:$0xff]  ;;  %v297_v39 = vld [vmem:[%s1602_s15 + $0x10] sm:$0xff] }
  0x2b   : > { %1281 = vmatprep.subr.bf16.mxu1 %v1429_v14  ;;  %v304_v36 = vpack.c.bf16 %v296_v33, %v296_v33  ;;  %v303_v38 = vpack.c.bf16 %v295_v35, %v295_v35  ;;  %v305_v40 = vpack.c.bf16 %v297_v39, %v297_v39  ;;  %902 = vmatprep.mubr.bf16.mxu1 %v306_v37  ;;  %v1450_v43 = vld [vmem:[#allocation3 + $0x138] sm:$0xff]   ;;  %v1452_v45 = vld [vmem:[#allocation3 + $0x170] sm:$0xff]   ;;  %v1456_v49 = vld [vmem:[#allocation3 + $0x168] sm:$0xff]  }
  0x2c   : > { %v1451_v44 = vld [vmem:[#allocation3 + $0x1b8] sm:$0xff]   ;;  %v1453_v46 = vld [vmem:[#allocation3 + $0x1f0] sm:$0xff]   ;;  %v1457_v50 = vld [vmem:[#allocation3 + $0x1e8] sm:$0xff]  }
  0x2d   : > { %1260 = vmatpush3.bf16.msra.mxu0 %v1430_v15  ;;  %862 = vmatprep.mubr.bf16.mxu0 %v304_v36  ;;  %v1454_v47 = vld [vmem:[#allocation3 + $0x130] sm:$0xff]   ;;  %v1458_v51 = vld [vmem:[#allocation3 + $0x128] sm:$0xff]   ;;  %v1460_v53 = vld [vmem:[#allocation3 + $0x160] sm:$0xff]  }
  0x2e   : > { %1282 = vmatpush3.bf16.msra.mxu1 %v1431_v16  ;;  %1261 = vmatprep.subr.bf16.mxu0 %v1432_v17  ;;  %v1455_v48 = vld [vmem:[#allocation3 + $0x1b0] sm:$0xff]   ;;  %v1459_v52 = vld [vmem:[#allocation3 + $0x1a8] sm:$0xff]   ;;  %v1461_v54 = vld [vmem:[#allocation3 + $0x1e0] sm:$0xff]  }
  0x2f   : > { %1283 = vmatprep.subr.bf16.mxu1 %v1433_v18  ;;  %v1462_v55 = vld [vmem:[#allocation3 + $0x120] sm:$0xff]   ;;  %v1464_v57 = vld [vmem:[#allocation3 + $0x158] sm:$0xff]   ;;  %v1468_v61 = vld [vmem:[#allocation3 + $0x150] sm:$0xff]   ;;  %v1521_v18 = vmov 0.0  }
  0x30   : > { %v1463_v56 = vld [vmem:[#allocation3 + $0x1a0] sm:$0xff]   ;;  %v1465_v58 = vld [vmem:[#allocation3 + $0x1d8] sm:$0xff]   ;;  %v1469_v62 = vld [vmem:[#allocation3 + $0x1d0] sm:$0xff]  }
  0x31   : > { %1262 = vmatpush3.bf16.msra.mxu0 %v1434_v19  ;;  %v1466_v59 = vld [vmem:[#allocation3 + $0x118] sm:$0xff]   ;;  %v1470_v63 = vld [vmem:[#allocation3 + $0x110] sm:$0xff]   ;;  %v1472_v1 = vld [vmem:[#allocation3 + $0x148] sm:$0xff]  }
  0x32   : > { %1284 = vmatpush3.bf16.msra.mxu1 %v1435_v20  ;;  %1263 = vmatprep.subr.bf16.mxu0 %v1436_v21  ;;  %v1467_v60 = vld [vmem:[#allocation3 + $0x198] sm:$0xff]   ;;  %v1471_v0 = vld [vmem:[#allocation3 + $0x190] sm:$0xff]   ;;  %v1473_v2 = vld [vmem:[#allocation3 + $0x1c8] sm:$0xff]  }
  0x33   : > { %1285 = vmatprep.subr.bf16.mxu1 %v1437_v22  ;;  %v1474_v3 = vld [vmem:[#allocation3 + $0x108] sm:$0xff]   ;;  %v1476_v5 = vld [vmem:[#allocation3 + $0x140] sm:$0xff]   ;;  %v302_v10 = vld [vmem:[%s1602_s15 + $0x38] sm:$0xff] }
  0x34   : > { %v1475_v4 = vld [vmem:[#allocation3 + $0x188] sm:$0xff]   ;;  %v1477_v6 = vld [vmem:[#allocation3 + $0x1c0] sm:$0xff]   ;;  %v310_v12 = vpack.c.bf16 %v302_v10, %v302_v10  ;;  %v1006_v17 = vld [vmem:[%s1679_s3 + $0x78] sm:$0xff] }
  0x35   : > { %1264 = vmatpush3.bf16.msra.mxu0 %v1438_v23  ;;  %v1478_v7 = vld [vmem:[#allocation3 + $0x100] sm:$0xff]   ;;  %v301_v14 = vld [vmem:[%s1602_s15 + $0x30] sm:$0xff]  ;;  %v1002_v22 = vld [vmem:[%s1679_s3 + $0x58] sm:$0xff] }
  0x36   : > { %1286 = vmatpush3.bf16.msra.mxu1 %v1439_v24  ;;  %1265 = vmatprep.subr.bf16.mxu0 %v1440_v25  ;;  %v1479_v8 = vld [vmem:[#allocation3 + $0x180] sm:$0xff]   ;;  %v309_v16 = vpack.c.bf16 %v301_v14, %v301_v14  ;;  %v1005_v19 = vld [vmem:[%s1679_s3 + $0x70] sm:$0xff] }
  0x37   : > { %1287 = vmatprep.subr.bf16.mxu1 %v1441_v26  ;;  %v300_v9 = vld [vmem:[%s1602_s15 + $0x28] sm:$0xff]  ;;  %v299_v13 = vld [vmem:[%s1602_s15 + $0x20] sm:$0xff]  ;;  %v1001_v23 = vld [vmem:[%s1679_s3 + $0x50] sm:$0xff] }
  0x38   : > { %v308_v11 = vpack.c.bf16 %v300_v9, %v300_v9  ;;  %v307_v15 = vpack.c.bf16 %v299_v13, %v299_v13  ;;  %v1004_v20 = vld [vmem:[%s1679_s3 + $0x68] sm:$0xff]  ;;  %v1003_v21 = vld [vmem:[%s1679_s3 + $0x60] sm:$0xff]  ;;  %v998_v26 = vld [vmem:[%s1679_s3 + $0x38] sm:$0xff] }
  0x39   : > { %1266 = vmatpush3.bf16.msra.mxu0 %v1442_v27  ;;  %v1000_v24 = vld [vmem:[%s1679_s3 + $0x48] sm:$0xff]  ;;  %v999_v25 = vld [vmem:[%s1679_s3 + $0x40] sm:$0xff]  ;;  %v997_v27 = vld [vmem:[%s1679_s3 + $0x30] sm:$0xff] }
  0x3a   : > { %1288 = vmatpush3.bf16.msra.mxu1 %v1443_v28  ;;  %1267 = vmatprep.subr.bf16.mxu0 %v1444_v29  ;;  %v996_v28 = vld [vmem:[%s1679_s3 + $0x28] sm:$0xff]  ;;  %v995_v29 = vld [vmem:[%s1679_s3 + $0x20] sm:$0xff] }
  0x3b   : > { %1289 = vmatprep.subr.bf16.mxu1 %v1445_v30  ;;  %v994_v30 = vld [vmem:[%s1679_s3 + $0x18] sm:$0xff]  ;;  %v991_v33 = vld [vmem:[%s1679_s3] sm:$0xff] }
  0x3d   : > { %1268 = vmatpush3.bf16.msra.mxu0 %v1446_v31  ;;  %v993_v31 = vld [vmem:[%s1679_s3 + $0x10] sm:$0xff] }
  0x3e   : > { %1290 = vmatpush3.bf16.msra.mxu1 %v1447_v32  ;;  %1297 = vmatprep.subr.bf16.mxu0 %v1448_v41  ;;  %v992_v32 = vld [vmem:[%s1679_s3 + $0x8] sm:$0xff] }
  0x3f   : > { %1319 = vmatprep.subr.bf16.mxu1 %v1449_v42 }
  0x40   : > { %863 = vmatmul.mubr.bf16.vlgmr.msra.gmra.mxu0 %v303_v38 }
  0x41   : > { %903 = vmatmul.mubr.bf16.vlgmr.msra.gmra.mxu1 %v305_v40  ;;  %1298 = vmatpush3.bf16.msra.mxu0 %v1450_v43  ;;  %v1182_v43 = vld [vmem:[%s1678_s2] ss:$0 sm:$0xff] }
  0x42   : > { %1320 = vmatpush3.bf16.msra.mxu1 %v1451_v44  ;;  %1299 = vmatprep.subr.bf16.mxu0 %v1452_v45 }
  0x43   : > { %1321 = vmatprep.subr.bf16.mxu1 %v1453_v46  ;;  %942 = vmatprep.mubr.bf16.mxu0 %v308_v11 }
  0x44   : > { %982 = vmatprep.mubr.bf16.mxu1 %v310_v12 }
  0x45   : > { %1300 = vmatpush3.bf16.msra.mxu0 %v1454_v47 }
  0x46   : > { %1322 = vmatpush3.bf16.msra.mxu1 %v1455_v48  ;;  %1301 = vmatprep.subr.bf16.mxu0 %v1456_v49 }
  0x47   : > { %1323 = vmatprep.subr.bf16.mxu1 %v1457_v50 }
  0x49   : > { %1302 = vmatpush3.bf16.msra.mxu0 %v1458_v51 }
  0x4a   : > { %1324 = vmatpush3.bf16.msra.mxu1 %v1459_v52  ;;  %1303 = vmatprep.subr.bf16.mxu0 %v1460_v53 }
  0x4b   : > { %1325 = vmatprep.subr.bf16.mxu1 %v1461_v54 }
  0x4d   : > { %1304 = vmatpush3.bf16.msra.mxu0 %v1462_v55 }
  0x4e   : > { %1326 = vmatpush3.bf16.msra.mxu1 %v1463_v56  ;;  %1305 = vmatprep.subr.bf16.mxu0 %v1464_v57 }
  0x4f   : > { %1327 = vmatprep.subr.bf16.mxu1 %v1465_v58 }
  0x51   : > { %1306 = vmatpush3.bf16.msra.mxu0 %v1466_v59 }
  0x52   : > { %1328 = vmatpush3.bf16.msra.mxu1 %v1467_v60  ;;  %1307 = vmatprep.subr.bf16.mxu0 %v1468_v61  ;;  %v1247_v60 = vld [vmem:[%s1680_s4] ss:$0 sm:$0xff] }
  0x53   : > { %1329 = vmatprep.subr.bf16.mxu1 %v1469_v62 }
  0x55   : > { %1308 = vmatpush3.bf16.msra.mxu0 %v1470_v63 }
  0x56   : > { %1330 = vmatpush3.bf16.msra.mxu1 %v1471_v0  ;;  %1309 = vmatprep.subr.bf16.mxu0 %v1472_v1  ;;  %v1248_v0 = vld [vmem:[%s1681_s5] ss:$0 sm:$0xff] }
  0x57   : > { %1331 = vmatprep.subr.bf16.mxu1 %v1473_v2 }
  0x59   : > { %1310 = vmatpush3.bf16.msra.mxu0 %v1474_v3 }
  0x5a   : > { %1332 = vmatpush3.bf16.msra.mxu1 %v1475_v4  ;;  %1311 = vmatprep.subr.bf16.mxu0 %v1476_v5  ;;  %v1249_v4 = vld [vmem:[#allocation2] ss:$0 sm:$0xff] }
  0x5b   : > { %1333 = vmatprep.subr.bf16.mxu1 %v1477_v6 }
  0x5d   : > { %1312 = vmatpush3.bf16.msra.mxu0 %v1478_v7 }
  0x5e   : > { %1334 = vmatpush3.bf16.msra.mxu1 %v1479_v8  ;;  %1358 = vmatprep.subr.mxu0 %v1521_v18 }
  0x60   : > { %943 = vmatmul.mubr.bf16.vlgmr.msra.gmra.mxu0 %v307_v15 }
  0x61   : > { %983 = vmatmul.mubr.bf16.vlgmr.msra.gmra.mxu1 %v309_v16  ;;  %1359 = vmatpush3.msra.mxu0 %v1006_v17 }
  0x62   : > { %1360 = vmatprep.subr.mxu0 %v1521_v18  ;;  %1390 = vmatprep.mubr.msk.f32.mxu0 %vm1522_vm0, %v1521_v18 }
  0x63   : > { %1361 = vmatpush3.msra.mxu0 %v1005_v19 }
  0x64   : > { %1362 = vmatprep.subr.mxu0 %v1521_v18 }
  0x65   : > { %1363 = vmatpush3.msra.mxu0 %v1004_v20 }
  0x66   : > { %1364 = vmatprep.subr.mxu0 %v1521_v18 }
  0x67   : > { %1365 = vmatpush3.msra.mxu0 %v1003_v21 }
  0x68   : > { %1366 = vmatprep.subr.mxu0 %v1521_v18 }
  0x69   : > { %1367 = vmatpush3.msra.mxu0 %v1002_v22 }
  0x6a   : > { %1368 = vmatprep.subr.mxu0 %v1521_v18 }
  0x6b   : > { %1369 = vmatpush3.msra.mxu0 %v1001_v23 }
  0x6c   : > { %1370 = vmatprep.subr.mxu0 %v1521_v18 }
  0x6d   : > { %1371 = vmatpush3.msra.mxu0 %v1000_v24 }
  0x6e   : > { %1372 = vmatprep.subr.mxu0 %v1521_v18 }
  0x6f   : > { %1373 = vmatpush3.msra.mxu0 %v999_v25 }
  0x70   : > { %1374 = vmatprep.subr.mxu0 %v1521_v18 }
  0x71   : > { %1375 = vmatpush3.msra.mxu0 %v998_v26 }
  0x72   : > { %1376 = vmatprep.subr.mxu0 %v1521_v18 }
  0x73   : > { %1377 = vmatpush3.msra.mxu0 %v997_v27 }
  0x74   : > { %1378 = vmatprep.subr.mxu0 %v1521_v18 }
  0x75   : > { %1379 = vmatpush3.msra.mxu0 %v996_v28 }
  0x76   : > { %1380 = vmatprep.subr.mxu0 %v1521_v18 }
  0x77   : > { %1381 = vmatpush3.msra.mxu0 %v995_v29 }
  0x78   : > { %1382 = vmatprep.subr.mxu0 %v1521_v18 }
  0x79   : > { %1383 = vmatpush3.msra.mxu0 %v994_v30 }
  0x7a   : > { %1384 = vmatprep.subr.mxu0 %v1521_v18 }
  0x7b   : > { %1385 = vmatpush3.msra.mxu0 %v993_v31 }
  0x7c   : > { %1386 = vmatprep.subr.mxu0 %v1521_v18 }
  0x7d   : > { %1387 = vmatpush3.msra.mxu0 %v992_v32 }
  0x7e   : > { %1388 = vmatprep.subr.mxu0 %v1521_v18 }
  0x7f   : > { %1389 = vmatpush3.msra.mxu0 %v991_v33 }
 0x100   : > { %v1269_v34 = vpop.f32.mrf.mxu0 }
 0x101   : > { %v1291_v35 = vpop.f32.mrf.mxu1 }
 0x102   : > { %v1270_v36 = vpop.f32.mrf.mxu0 }
 0x103   : > { %v1292_v37 = vpop.f32.mrf.mxu1  ;;  %v1271_v42 = vadd.f32 %v1270_v36, %v1269_v34 }
 0x104   : > { %v1272_v38 = vpop.f32.mrf.mxu0  ;;  %v1293_v45 = vadd.f32 %v1292_v37, %v1291_v35 }
 0x105   : > { %v1294_v39 = vpop.f32.mrf.mxu1  ;;  %v865_v44 = vadd.f32 %v1271_v42, %v1182_v43 }
 0x106   : > { %v1273_v40 = vpop.f32.mrf.mxu0 }
 0x107   : > { %v1295_v41 = vpop.f32.mrf.mxu1  ;;  %v905_v49 = vadd.f32 %v1293_v45, %v865_v44 }
 0x120   : > { %v1313_v46 = vpop.f32.mrf.mxu0 }
 0x121   : > { %v1335_v47 = vpop.f32.mrf.mxu1 }
 0x122   : > { %v1314_v48 = vpop.f32.mrf.mxu0 }
 0x123   : > { %v1315_v50 = vadd.f32 %v1314_v48, %v1313_v46  ;;  %v1336_v51 = vpop.f32.mrf.mxu1 }
 0x124   : > { %v1316_v52 = vpop.f32.mrf.mxu0  ;;  %v1337_v54 = vadd.f32 %v1336_v51, %v1335_v47 }
 0x125   : > { %v945_v53 = vadd.f32 %v1315_v50, %v905_v49  ;;  %v1338_v55 = vpop.f32.mrf.mxu1 }
 0x126   : > { %v1317_v56 = vpop.f32.mrf.mxu0 }
 0x127   : > { %v985_v57 = vadd.f32 %v1337_v54, %v945_v53  ;;  %v1339_v58 = vpop.f32.mrf.mxu1 }
 0x129   : > { %v990_v59 = vmax.f32 %v985_v57, 0.0 }
 0x12b   : > { %1391 = vmatmul.mubr.f32.vlgmr.msra.gmra.mxu0 %v990_v59 }
 0x1eb   : > { %v1080_v61 = vpop.f32.mrf.mxu0 }
 0x1ec   : > { %v1081_v62 = vadd.f32 %v1247_v60, %v1080_v61 }
 0x1ed   : > { %v1392_v63 = vpop.f32.mrf.mxu0 }
 0x1ee   : > { %v1084_v1 = vmax.f32 %v1081_v62, 0.0 }
 0x1f0   : > { %v1092_v2 = vmul.f32 %v1248_v0, %v1084_v1 }
 0x1f2   : > { %v1094_v3 = vsel %vm1093_vm1, %v1092_v2, 0.0 }
 0x1f3   : > { %1095 = vadd.xlane.f32.xlu0 %v1094_v3 }
 0x27c   : > { %v1096_v5 = vpop.xlane.xlu0 %1095 }
 0x27d   : > { %v1104_v6 = vadd.f32 %v1249_v4, %v1096_v5 }
 0x27f   : > { %1106 = vst.msk [vmem:[%s293_s13] sm:$0xff] %vm1105_vm2, %v1104_v6 }
 0x280 PF: > { %s20_s26 = sadd.s32 1, %s1516_s26  }
 0x281   : > { %p17_p1 = scmp.ge.s32.totalorder %s20_s26, 5  }
 0x283   :  { %19 = sbr.rel (!%p17_p1) target bundleno = 4 (0x4), region = 83 }
 0x288   :  { %1126 = vsyncpa [#allocation4], 1 }
 0x289   :  { %1128 = vsyncpa [#allocation4 + $0x1], 1 }

</bundles_post_ra>
